<compile_context>
chip_gen: v6e
topology: v6e:2x2x1
jax: 0.10.0
libtpu: 0.0.40
codegen_flags: <defaults>
</compile_context>

<pallas_src>
import jax
import jax.numpy as jnp
from jax.experimental import pallas as pl
from jax.experimental.pallas import tpu as pltpu


def _bilinear_matrix(in_size: int, out_size: int, dtype=jnp.float32):
    """Row-stochastic (out_size, in_size) matrix matching
    F.interpolate(mode='bilinear', align_corners=False, antialias=False)."""
    scale = in_size / out_size
    o = jnp.arange(out_size, dtype=jnp.float32)
    src = (o + 0.5) * scale - 0.5
    src = jnp.maximum(src, 0.0)                       # PyTorch clamps src >= 0
    i0 = jnp.floor(src).astype(jnp.int32)
    i0 = jnp.minimum(i0, in_size - 1)
    i1 = jnp.minimum(i0 + 1, in_size - 1)
    frac = src - i0.astype(jnp.float32)
    rows = jnp.arange(out_size)
    w = jnp.zeros((out_size, in_size), jnp.float32)
    w = w.at[rows, i0].add(1.0 - frac)
    w = w.at[rows, i1].add(frac)
    return w.astype(dtype)


def _resize_norm_kernel(scale_ref, bias_ref, wh_ref, wwt_ref, x_ref, o_ref,
                        acc_ref):
    # x_ref:  (C, tH, W_in)    wh_ref: (H_out, tH)    wwt_ref: (W_in, W_out)
    # o_ref:  (C, H_out, W_out)   acc_ref: (C, H_out, W_out) f32 scratch
    h = pl.program_id(1)

    @pl.when(h == 0)
    def _init():
        acc_ref[...] = jnp.zeros_like(acc_ref)

    C = x_ref.shape[0]
    wh = wh_ref[...]                                  # bf16 (H_out, tH)
    wwt = wwt_ref[...]                                # bf16 (W_in, W_out)
    # Per-channel fusion: both matmuls per channel keeps the live intermediate
    # at (tH, W_out) and avoids reshape/slice relayouts.  C is small; unrolled.
    for c in range(C):
        xc = x_ref[c].astype(jnp.bfloat16)            # no-op if already bf16
        t = jnp.dot(xc, wwt, preferred_element_type=jnp.float32)   # (tH, W_out)
        acc_ref[c] += jnp.dot(wh, t.astype(jnp.bfloat16),
                              preferred_element_type=jnp.float32)  # (H_out, W_out)

    @pl.when(h == pl.num_programs(1) - 1)
    def _finish():
        for c in range(C):
            o_ref[c] = (acc_ref[c] * scale_ref[c] + bias_ref[c]).astype(o_ref.dtype)


def resize_and_normalize(img, mean, std, expected_size=(224, 224)):
    N, C, H_in, W_in = img.shape
    H_out, W_out = expected_size

    # MXU operands in bf16.  Default MXU precision truncates f32 to bf16
    # anyway, so this only halves HBM read bytes.  (In a real pipeline the
    # producer should hand us bf16/uint8 directly to avoid the convert pass.)
    if jnp.issubdtype(img.dtype, jnp.floating) and img.dtype != jnp.bfloat16:
        x = img.astype(jnp.bfloat16)
    else:
        x = img                                       # bf16 or uint8: DMA as-is
    out_dtype = img.dtype if jnp.issubdtype(img.dtype, jnp.floating) else jnp.float32

    wh = _bilinear_matrix(H_in, H_out, jnp.bfloat16)      # (H_out, H_in)
    wwt = _bilinear_matrix(W_in, W_out, jnp.bfloat16).T   # (W_in, W_out)

    mean = jnp.asarray(mean, jnp.float32).reshape(-1)
    std = jnp.asarray(std, jnp.float32).reshape(-1)
    inv_std = 1.0 / std                               # fused scale
    bias = -mean * inv_std                            # fused bias

    itemsize_in = jnp.dtype(x.dtype).itemsize
    itemsize_out = jnp.dtype(out_dtype).itemsize

    # Generation-aware VMEM budget (~75% of physical per-core capacity).
    try:
        vmem_cap = int(pltpu.get_tpu_info().vmem_capacity_bytes)
    except Exception:
        vmem_cap = 64 << 20
    budget = int(0.75 * vmem_cap)

    def _total_bytes(th, h_total):
        in_blk = itemsize_in * C * th * W_in
        out_blk = itemsize_out * C * H_out * W_out
        acc_blk = 4 * C * H_out * W_out
        w_bytes = 2 * (H_out * h_total + W_in * W_out)          # bf16 weights
        # double-buffered in/out/weight blocks + accumulator + headroom
        return 2 * in_blk + 2 * out_blk + acc_blk + 2 * w_bytes + (2 << 20)

    # H_in chunking (reduction axis) only when a full frame would blow VMEM.
    # tH is a multiple of 128 (wh last-dim tiling) and of 8 (image sublane dim).
    CHUNK = 512
    tH, H_pad = H_in, H_in
    if _total_bytes(H_in, H_in) > budget and H_in > CHUNK:
        tH = CHUNK
        H_pad = ((H_in + CHUNK - 1) // CHUNK) * CHUNK
        pad = H_pad - H_in
        # Zero-pad image rows and the matching (zero-weight) wh columns, so
        # edge chunks are fully defined and contribute exactly zero.
        x = jnp.pad(x, ((0, 0), (0, 0), (0, pad), (0, 0)))
        wh = jnp.pad(wh, ((0, 0), (0, pad)))
    n_h = H_pad // tH

    vmem_limit = int(min(max(_total_bytes(tH, H_pad), 16 << 20), budget))

    # Advisory cost estimate (bf16 inputs/weights).
    flops = 2 * N * C * (H_pad * W_in * W_out + H_out * H_pad * W_out)
    bytes_accessed = (itemsize_in * N * C * H_pad * W_in
                      + itemsize_out * N * C * H_out * W_out
                      + 2 * (H_out * H_pad + W_in * W_out)
                      + 2 * 4 * C)

    sq = pl.Squeezed()
    return pl.pallas_call(
        _resize_norm_kernel,
        out_shape=jax.ShapeDtypeStruct((N, C, H_out, W_out), out_dtype),
        grid_spec=pltpu.PrefetchScalarGridSpec(
            num_scalar_prefetch=0,
            grid=(N, n_h),                            # reduction axis last
            in_specs=[
                pl.BlockSpec(memory_space=pltpu.MemorySpace.SMEM),  # inv_std (C,)
                pl.BlockSpec(memory_space=pltpu.MemorySpace.SMEM),  # bias    (C,)
                pl.BlockSpec((H_out, tH), lambda n, h: (0, h)),     # Wh chunk
                pl.BlockSpec((W_in, W_out), lambda n, h: (0, 0)),   # Ww^T
                pl.BlockSpec((sq, C, tH, W_in), lambda n, h: (n, 0, h, 0)),
            ],
            out_specs=pl.BlockSpec((sq, C, H_out, W_out),
                                   lambda n, h: (n, 0, 0, 0)),
            scratch_shapes=[pltpu.VMEM((C, H_out, W_out), jnp.float32)],
        ),
        compiler_params=pltpu.CompilerParams(
            dimension_semantics=("parallel", "arbitrary"),
            vmem_limit_bytes=vmem_limit),
        cost_estimate=pl.CostEstimate(
            flops=flops, transcendentals=0, bytes_accessed=bytes_accessed),
    )(inv_std, bias, wh, wwt, x)


if __name__ == "__main__":
    key = jax.random.PRNGKey(0)
    N, C, H_in, W_in = 2, 3, 16, 16
    expected_size = (32, 32)

    img = jax.random.uniform(key, (N, C, H_in, W_in), dtype=jnp.float32)
    mean = [0.485, 0.456, 0.406]
    std = [0.229, 0.224, 0.225]

    out = resize_and_normalize(img, mean, std, expected_size)
    out = jax.block_until_ready(out)

    # Pure-JAX reference (high precision) using the same separable formulation.
    wh_ref = _bilinear_matrix(H_in, expected_size[0])
    ww_ref = _bilinear_matrix(W_in, expected_size[1])
    ref = jnp.einsum("oh,nchw,pw->ncop", wh_ref, img, ww_ref,
                     precision=jax.lax.Precision.HIGHEST)
    ref = (ref - jnp.asarray(mean).reshape(1, -1, 1, 1)) / \
          jnp.asarray(std).reshape(1, -1, 1, 1)

    assert out.shape == (N, C, expected_size[0], expected_size[1])
    # bf16 MXU operands (same as default MXU precision) -> relaxed tolerance.
    assert jnp.allclose(out, ref, atol=5e-2, rtol=1e-2), \
        f"max err = {jnp.max(jnp.abs(out - ref))}"
    print("KERNEL_OK")
</pallas_src>

<mosaic_0001>
module attributes {stable_mosaic.version = 11 : i64} {
  func.func @_resize_norm_kernel(%arg0: i32, %arg1: i32, %arg2: memref<3xf32, #tpu.memory_space<smem>>, %arg3: memref<3xf32, #tpu.memory_space<smem>>, %arg4: memref<32x16xbf16, #tpu.memory_space<vmem>>, %arg5: memref<16x32xbf16, #tpu.memory_space<vmem>>, %arg6: memref<1x3x16x16xbf16, #tpu.memory_space<vmem>>, %arg7: memref<1x3x32x32xf32, #tpu.memory_space<vmem>>, %arg8: memref<3x32x32xf32, #tpu.memory_space<vmem>>) attributes {dimension_semantics = [#tpu.dimension_semantics<parallel>, #tpu.dimension_semantics<arbitrary>], iteration_bounds = array<i64: 2, 1>, scalar_prefetch = 0 : i64, scratch_operands = 1 : i64, tpu.core_type = #tpu.core_type<tc>, window_params = [{transform_indices = @transform_0, window_bounds = array<i64: 3>}, {transform_indices = @transform_1, window_bounds = array<i64: 3>}, {transform_indices = @transform_2, window_bounds = array<i64: 32, 16>}, {pipeline_mode = #tpu.pipeline_mode<synchronous>, transform_indices = @transform_3, window_bounds = array<i64: 16, 32>}, {transform_indices = @transform_4, window_bounds = array<i64: 1, 3, 16, 16>}, {transform_indices = @transform_5, window_bounds = array<i64: 1, 3, 32, 32>}]} {
    %c0_i32 = arith.constant 0 : i32
    %0 = arith.cmpi eq, %arg1, %c0_i32 : i32
    %1 = arith.extui %0 : i1 to i32
    %c0_i32_0 = arith.constant 0 : i32
    %2 = arith.cmpi ne, %1, %c0_i32_0 : i32
    scf.if %2 {
      %cst_39 = arith.constant 0.000000e+00 : f32
      %41 = vector.broadcast %cst_39 : f32 to vector<3x32x32xf32>
      %c0_40 = arith.constant 0 : index
      %c0_41 = arith.constant 0 : index
      %c0_42 = arith.constant 0 : index
      %42 = vector.load %arg8[%c0_40, %c0_41, %c0_42] : memref<3x32x32xf32, #tpu.memory_space<vmem>>, vector<3x32x32xf32>
      tpu.vector_store %arg8[%c0_40, %c0_41, %c0_42], %41 {strides = array<i32>} : memref<3x32x32xf32, #tpu.memory_space<vmem>>, vector<3x32x32xf32>,
    } else {
    }
    %c0 = arith.constant 0 : index
    %c0_1 = arith.constant 0 : index
    %3 = vector.load %arg4[%c0, %c0_1] : memref<32x16xbf16, #tpu.memory_space<vmem>>, vector<32x16xbf16>
    %c0_2 = arith.constant 0 : index
    %c0_3 = arith.constant 0 : index
    %4 = vector.load %arg5[%c0_2, %c0_3] : memref<16x32xbf16, #tpu.memory_space<vmem>>, vector<16x32xbf16>
    %c0_4 = arith.constant 0 : index
    %c0_5 = arith.constant 0 : index
    %c0_6 = arith.constant 0 : index
    %c0_7 = arith.constant 0 : index
    %5 = vector.load %arg6[%c0_4, %c0_5, %c0_6, %c0_7] : memref<1x3x16x16xbf16, #tpu.memory_space<vmem>>, vector<1x1x16x16xbf16>
    %6 = vector.shape_cast %5 : vector<1x1x16x16xbf16> to vector<16x16xbf16>
    %cst = arith.constant dense<0.000000e+00> : vector<16x32xf32>
    %7 = tpu.matmul %6, %4, %cst {dimension_numbers = #tpu.dot_dimension_numbers<[1], [0], [0], [1], [0, 0, 1, 1], [], []>} : vector<16x16xbf16>, vector<16x32xbf16>, vector<16x32xf32> -> vector<16x32xf32>
    %c0_8 = arith.constant 0 : index
    %c0_9 = arith.constant 0 : index
    %c0_10 = arith.constant 0 : index
    %8 = vector.load %arg8[%c0_8, %c0_9, %c0_10] : memref<3x32x32xf32, #tpu.memory_space<vmem>>, vector<1x32x32xf32>
    %9 = vector.shape_cast %8 : vector<1x32x32xf32> to vector<32x32xf32>
    %10 = arith.truncf %7 : vector<16x32xf32> to vector<16x32xbf16>
    %cst_11 = arith.constant dense<0.000000e+00> : vector<32x32xf32>
    %11 = tpu.matmul %3, %10, %cst_11 {dimension_numbers = #tpu.dot_dimension_numbers<[1], [0], [0], [1], [0, 0, 1, 1], [], []>} : vector<32x16xbf16>, vector<16x32xbf16>, vector<32x32xf32> -> vector<32x32xf32>
    %12 = arith.addf %9, %11 : vector<32x32xf32>
    %c0_12 = arith.constant 0 : index
    %c0_13 = arith.constant 0 : index
    %c0_14 = arith.constant 0 : index
    %13 = vector.load %arg8[%c0_12, %c0_13, %c0_14] : memref<3x32x32xf32, #tpu.memory_space<vmem>>, vector<1x32x32xf32>
    %14 = vector.shape_cast %13 : vector<1x32x32xf32> to vector<32x32xf32>
    %15 = vector.shape_cast %12 : vector<32x32xf32> to vector<1x32x32xf32>
    tpu.vector_store %arg8[%c0_12, %c0_13, %c0_14], %15 {strides = array<i32>} : memref<3x32x32xf32, #tpu.memory_space<vmem>>, vector<1x32x32xf32>,
    %c0_15 = arith.constant 0 : index
    %c1 = arith.constant 1 : index
    %c0_16 = arith.constant 0 : index
    %c0_17 = arith.constant 0 : index
    %16 = vector.load %arg6[%c0_15, %c1, %c0_16, %c0_17] : memref<1x3x16x16xbf16, #tpu.memory_space<vmem>>, vector<1x1x16x16xbf16>
    %17 = vector.shape_cast %16 : vector<1x1x16x16xbf16> to vector<16x16xbf16>
    %cst_18 = arith.constant dense<0.000000e+00> : vector<16x32xf32>
    %18 = tpu.matmul %17, %4, %cst_18 {dimension_numbers = #tpu.dot_dimension_numbers<[1], [0], [0], [1], [0, 0, 1, 1], [], []>} : vector<16x16xbf16>, vector<16x32xbf16>, vector<16x32xf32> -> vector<16x32xf32>
    %c1_19 = arith.constant 1 : index
    %c0_20 = arith.constant 0 : index
    %c0_21 = arith.constant 0 : index
    %19 = vector.load %arg8[%c1_19, %c0_20, %c0_21] : memref<3x32x32xf32, #tpu.memory_space<vmem>>, vector<1x32x32xf32>
    %20 = vector.shape_cast %19 : vector<1x32x32xf32> to vector<32x32xf32>
    %21 = arith.truncf %18 : vector<16x32xf32> to vector<16x32xbf16>
    %cst_22 = arith.constant dense<0.000000e+00> : vector<32x32xf32>
    %22 = tpu.matmul %3, %21, %cst_22 {dimension_numbers = #tpu.dot_dimension_numbers<[1], [0], [0], [1], [0, 0, 1, 1], [], []>} : vector<32x16xbf16>, vector<16x32xbf16>, vector<32x32xf32> -> vector<32x32xf32>
    %23 = arith.addf %20, %22 : vector<32x32xf32>
    %c1_23 = arith.constant 1 : index
    %c0_24 = arith.constant 0 : index
    %c0_25 = arith.constant 0 : index
    %24 = vector.load %arg8[%c1_23, %c0_24, %c0_25] : memref<3x32x32xf32, #tpu.memory_space<vmem>>, vector<1x32x32xf32>
    %25 = vector.shape_cast %24 : vector<1x32x32xf32> to vector<32x32xf32>
    %26 = vector.shape_cast %23 : vector<32x32xf32> to vector<1x32x32xf32>
    tpu.vector_store %arg8[%c1_23, %c0_24, %c0_25], %26 {strides = array<i32>} : memref<3x32x32xf32, #tpu.memory_space<vmem>>, vector<1x32x32xf32>,
    %c0_26 = arith.constant 0 : index
    %c2 = arith.constant 2 : index
    %c0_27 = arith.constant 0 : index
    %c0_28 = arith.constant 0 : index
    %27 = vector.load %arg6[%c0_26, %c2, %c0_27, %c0_28] : memref<1x3x16x16xbf16, #tpu.memory_space<vmem>>, vector<1x1x16x16xbf16>
    %28 = vector.shape_cast %27 : vector<1x1x16x16xbf16> to vector<16x16xbf16>
    %cst_29 = arith.constant dense<0.000000e+00> : vector<16x32xf32>
    %29 = tpu.matmul %28, %4, %cst_29 {dimension_numbers = #tpu.dot_dimension_numbers<[1], [0], [0], [1], [0, 0, 1, 1], [], []>} : vector<16x16xbf16>, vector<16x32xbf16>, vector<16x32xf32> -> vector<16x32xf32>
    %c2_30 = arith.constant 2 : index
    %c0_31 = arith.constant 0 : index
    %c0_32 = arith.constant 0 : index
    %30 = vector.load %arg8[%c2_30, %c0_31, %c0_32] : memref<3x32x32xf32, #tpu.memory_space<vmem>>, vector<1x32x32xf32>
    %31 = vector.shape_cast %30 : vector<1x32x32xf32> to vector<32x32xf32>
    %32 = arith.truncf %29 : vector<16x32xf32> to vector<16x32xbf16>
    %cst_33 = arith.constant dense<0.000000e+00> : vector<32x32xf32>
    %33 = tpu.matmul %3, %32, %cst_33 {dimension_numbers = #tpu.dot_dimension_numbers<[1], [0], [0], [1], [0, 0, 1, 1], [], []>} : vector<32x16xbf16>, vector<16x32xbf16>, vector<32x32xf32> -> vector<32x32xf32>
    %34 = arith.addf %31, %33 : vector<32x32xf32>
    %c2_34 = arith.constant 2 : index
    %c0_35 = arith.constant 0 : index
    %c0_36 = arith.constant 0 : index
    %35 = vector.load %arg8[%c2_34, %c0_35, %c0_36] : memref<3x32x32xf32, #tpu.memory_space<vmem>>, vector<1x32x32xf32>
    %36 = vector.shape_cast %35 : vector<1x32x32xf32> to vector<32x32xf32>
    %37 = vector.shape_cast %34 : vector<32x32xf32> to vector<1x32x32xf32>
    tpu.vector_store %arg8[%c2_34, %c0_35, %c0_36], %37 {strides = array<i32>} : memref<3x32x32xf32, #tpu.memory_space<vmem>>, vector<1x32x32xf32>,
    %c0_i32_37 = arith.constant 0 : i32
    %38 = arith.cmpi eq, %arg1, %c0_i32_37 : i32
    %39 = arith.extui %38 : i1 to i32
    %c0_i32_38 = arith.constant 0 : i32
    %40 = arith.cmpi ne, %39, %c0_i32_38 : i32
    scf.if %40 {
      %c0_39 = arith.constant 0 : index
      %c0_40 = arith.constant 0 : index
      %c0_41 = arith.constant 0 : index
      %41 = vector.load %arg8[%c0_39, %c0_40, %c0_41] : memref<3x32x32xf32, #tpu.memory_space<vmem>>, vector<1x32x32xf32>
      %42 = vector.shape_cast %41 : vector<1x32x32xf32> to vector<32x32xf32>
      %c0_42 = arith.constant 0 : index
      %43 = memref.load %arg2[%c0_42] : memref<3xf32, #tpu.memory_space<smem>>
      %44 = vector.broadcast %43 : f32 to vector<32x32xf32>
      %45 = arith.mulf %42, %44 : vector<32x32xf32>
      %c0_43 = arith.constant 0 : index
      %46 = memref.load %arg3[%c0_43] : memref<3xf32, #tpu.memory_space<smem>>
      %47 = vector.broadcast %46 : f32 to vector<32x32xf32>
      %48 = arith.addf %45, %47 : vector<32x32xf32>
      %c0_44 = arith.constant 0 : index
      %c0_45 = arith.constant 0 : index
      %c0_46 = arith.constant 0 : index
      %c0_47 = arith.constant 0 : index
      %49 = vector.load %arg7[%c0_44, %c0_45, %c0_46, %c0_47] : memref<1x3x32x32xf32, #tpu.memory_space<vmem>>, vector<1x1x32x32xf32>
      %50 = vector.shape_cast %49 : vector<1x1x32x32xf32> to vector<32x32xf32>
      %51 = vector.shape_cast %48 : vector<32x32xf32> to vector<1x1x32x32xf32>
      tpu.vector_store %arg7[%c0_44, %c0_45, %c0_46, %c0_47], %51 {strides = array<i32>} : memref<1x3x32x32xf32, #tpu.memory_space<vmem>>, vector<1x1x32x32xf32>,
      %c1_48 = arith.constant 1 : index
      %c0_49 = arith.constant 0 : index
      %c0_50 = arith.constant 0 : index
      %52 = vector.load %arg8[%c1_48, %c0_49, %c0_50] : memref<3x32x32xf32, #tpu.memory_space<vmem>>, vector<1x32x32xf32>
      %53 = vector.shape_cast %52 : vector<1x32x32xf32> to vector<32x32xf32>
      %c1_51 = arith.constant 1 : index
      %54 = memref.load %arg2[%c1_51] : memref<3xf32, #tpu.memory_space<smem>>
      %55 = vector.broadcast %54 : f32 to vector<32x32xf32>
      %56 = arith.mulf %53, %55 : vector<32x32xf32>
      %c1_52 = arith.constant 1 : index
      %57 = memref.load %arg3[%c1_52] : memref<3xf32, #tpu.memory_space<smem>>
      %58 = vector.broadcast %57 : f32 to vector<32x32xf32>
      %59 = arith.addf %56, %58 : vector<32x32xf32>
      %c0_53 = arith.constant 0 : index
      %c1_54 = arith.constant 1 : index
      %c0_55 = arith.constant 0 : index
      %c0_56 = arith.constant 0 : index
      %60 = vector.load %arg7[%c0_53, %c1_54, %c0_55, %c0_56] : memref<1x3x32x32xf32, #tpu.memory_space<vmem>>, vector<1x1x32x32xf32>
      %61 = vector.shape_cast %60 : vector<1x1x32x32xf32> to vector<32x32xf32>
      %62 = vector.shape_cast %59 : vector<32x32xf32> to vector<1x1x32x32xf32>
      tpu.vector_store %arg7[%c0_53, %c1_54, %c0_55, %c0_56], %62 {strides = array<i32>} : memref<1x3x32x32xf32, #tpu.memory_space<vmem>>, vector<1x1x32x32xf32>,
      %c2_57 = arith.constant 2 : index
      %c0_58 = arith.constant 0 : index
      %c0_59 = arith.constant 0 : index
      %63 = vector.load %arg8[%c2_57, %c0_58, %c0_59] : memref<3x32x32xf32, #tpu.memory_space<vmem>>, vector<1x32x32xf32>
      %64 = vector.shape_cast %63 : vector<1x32x32xf32> to vector<32x32xf32>
      %c2_60 = arith.constant 2 : index
      %65 = memref.load %arg2[%c2_60] : memref<3xf32, #tpu.memory_space<smem>>
      %66 = vector.broadcast %65 : f32 to vector<32x32xf32>
      %67 = arith.mulf %64, %66 : vector<32x32xf32>
      %c2_61 = arith.constant 2 : index
      %68 = memref.load %arg3[%c2_61] : memref<3xf32, #tpu.memory_space<smem>>
      %69 = vector.broadcast %68 : f32 to vector<32x32xf32>
      %70 = arith.addf %67, %69 : vector<32x32xf32>
      %c0_62 = arith.constant 0 : index
      %c2_63 = arith.constant 2 : index
      %c0_64 = arith.constant 0 : index
      %c0_65 = arith.constant 0 : index
      %71 = vector.load %arg7[%c0_62, %c2_63, %c0_64, %c0_65] : memref<1x3x32x32xf32, #tpu.memory_space<vmem>>, vector<1x1x32x32xf32>
      %72 = vector.shape_cast %71 : vector<1x1x32x32xf32> to vector<32x32xf32>
      %73 = vector.shape_cast %70 : vector<32x32xf32> to vector<1x1x32x32xf32>
      tpu.vector_store %arg7[%c0_62, %c2_63, %c0_64, %c0_65], %73 {strides = array<i32>} : memref<1x3x32x32xf32, #tpu.memory_space<vmem>>, vector<1x1x32x32xf32>,
    } else {
    }
    return
  }
  func.func @transform_0(%arg0: i32, %arg1: i32) -> i32 {
    %c0_i32 = arith.constant 0 : i32
    %c0_i32_0 = arith.constant 0 : i32
    return %c0_i32 : i32
  }
  func.func @transform_1(%arg0: i32, %arg1: i32) -> i32 {
    %c0_i32 = arith.constant 0 : i32
    %c0_i32_0 = arith.constant 0 : i32
    return %c0_i32 : i32
  }
  func.func @transform_2(%arg0: i32, %arg1: i32) -> (i32, i32) {
    %c0_i32 = arith.constant 0 : i32
    %c0_i32_0 = arith.constant 0 : i32
    return %c0_i32, %arg1 : i32, i32
  }
  func.func @transform_3(%arg0: i32, %arg1: i32) -> (i32, i32) {
    %c0_i32 = arith.constant 0 : i32
    %c0_i32_0 = arith.constant 0 : i32
    %c0_i32_1 = arith.constant 0 : i32
    return %c0_i32, %c0_i32_0 : i32, i32
  }
  func.func @transform_4(%arg0: i32, %arg1: i32) -> (i32, i32, i32, i32) {
    %c0_i32 = arith.constant 0 : i32
    %c0_i32_0 = arith.constant 0 : i32
    %c0_i32_1 = arith.constant 0 : i32
    return %arg0, %c0_i32, %arg1, %c0_i32_0 : i32, i32, i32, i32
  }
  func.func @transform_5(%arg0: i32, %arg1: i32) -> (i32, i32, i32, i32) {
    %c0_i32 = arith.constant 0 : i32
    %c0_i32_0 = arith.constant 0 : i32
    %c0_i32_1 = arith.constant 0 : i32
    %c0_i32_2 = arith.constant 0 : i32
    return %arg0, %c0_i32, %c0_i32_0, %c0_i32_1 : i32, i32, i32, i32
  }
}

</mosaic_0001>

<bundles_post_ra>
// kernel: tpu_custom_call.1
= control target key start
LH: loop header
LB: loop body
LE: loop exit
PB: predicated region body
PF: predicated region fallthrough
CT: control target
= control target key end

     0   :  { %s1541_s0 = inlined_call_operand.vmem [shape: f32[3], index: 0, kind: input, shape index: {}]   ;;  %s1542_s1 = inlined_call_operand.vmem [shape: f32[3], index: 1, kind: input, shape index: {}]   ;;  %s1543_s2 = inlined_call_operand.vmem [shape: bf16[32,16], index: 2, kind: input, shape index: {}]   ;;  %s1544_s3 = inlined_call_operand.vmem [shape: bf16[16,32], index: 3, kind: input, shape index: {}]   ;;  %s1545_s4 = inlined_call_operand.hbm [shape: bf16[2,3,16,16], index: 4, kind: input, shape index: {}]   ;;  %s1546_s5 = inlined_call_operand.hbm [shape: f32[2,3,32,32], index: 5, kind: output, shape index: {}]  }
   0x1   :  { %1554 = sst [smem:[#allocation16_spill]] %s1541_s0 }
   0x2   :  { %1555 = sst [smem:[#allocation17_spill]] %s1542_s1 }
   0x3   :  { %10 = vsyncpa [#allocation6], 0 }
   0x4   :  { %11 = vsyncpa [#allocation8], 0 }
   0x5   :  { %12 = vsyncpa [#allocation4], 0 }
   0x6   :  { %14 = vsyncpa [#allocation4 + $0x1], 0 }
   0x7   :  { %15 = vsyncpa [#allocation5], 0 }
   0x8   :  { %17 = vsyncpa [#allocation5 + $0x1], 0  ;;  %s1279_s18 = smov 0   ;;  %s1281_s19 = smov 0  }
   0x9   :  { %s1283_s20 = smov 0   ;;  %s1285_s21 = smov 0  }
   0xa   :  { %s1287_s22 = smov 0   ;;  %s1289_s23 = smov 0  }
   0xb LB: > { %s895_s24 = sadd.s32 4294967295, %s1237_s23   ;;  %s896_s25 = sadd.s32 4294967294, %s1237_s23   ;;  %s1237_s23 = sphi %s1289_s23, %s23_s23   ;;  %s1233_s22 = sphi %s1287_s22, %s1579_s22   ;;  %s1229_s21 = sphi %s1285_s21, %s1578_s21   ;;  %s1225_s20 = sphi %s1283_s20, %s1577_s20   ;;  %s1221_s19 = sphi %s1281_s19, %s1576_s19   ;;  %s1217_s18 = sphi %s1279_s18, %s1575_s18  }
   0xc   : > { %s133_s26 = sadd.s32 1, %s1225_s20  ;;  %p140_p0 = scmp.ne.s32.totalorder %s1225_s20, %s1221_s19 }
   0xd   : > { %p141_p1 = scmp.eq.s32.totalorder %s1237_s23, 0  ;;  %p146_p2 = scmp.ne.s32.totalorder %s1221_s19, %s1217_s18 }
   0xe   : > { %p1317_p3 = scmp.eq.s32.totalorder %s895_s24, 0  ;;  %p170_p4 = scmp.eq.s32.totalorder %s895_s24, 1 }
   0xf   : > { %p1321_p5 = por %p141_p1, %p140_p0  ;;  %p176_p6 = scmp.eq.s32.totalorder %s896_s25, 1 }
  0x10   : > { %s1556_s27 = scalar_select %p1317_p3, 1, 0 }
  0x11   : > { %p1327_p7 = por %p1317_p3, %p146_p2  ;;  %p1331_p8 = por %p170_p4, %p140_p0 }
  0x12   : > { %p1335_p9 = por %p176_p6, %p146_p2  ;;  %p897_p10 = scmp.ge.s32.totalorder %s1237_s23, 1 }
  0x13   : > { %s1558_s29 = scalar_select %p1327_p7, 1, 0 }
  0x14   : > { %s1559_s30 = scalar_select %p1331_p8, 1, 0 }
  0x15   : > { %s1560_s6 = scalar_select %p1335_p9, 1, 0 }
  0x16   : > { %p183_p11 = scmp.lt.s32.totalorder %s1237_s23, 3  ;;  %s1561_s0 = sld [smem:[#allocation16_spill]] }
  0x17   : > { %p1025_p0 = scmp.lt.s32.totalorder %s1237_s23, 2  ;;  %s1563_s1 = sld [smem:[#allocation17_spill]] }
  0x18   : > { %p1344_p12 = pnand %p897_p10, %p183_p11 }
  0x19   : > { %p1357_p2 = pnand %p1025_p0, %p1321_p5 }
  0x1a   : > { %s1562_s10 = scalar_select %p1344_p12, 1, 0 }
  0x1b   : > { %p1008_p1 = pneg %p1344_p12 }
  0x1c   : > { %s196_s9 = sshll.u32 %s1561_s0, 4  ;;  %s197_s9 = int_to_ptr.vmem [resolvable:$true] %s196_s9 }
  0x1d   : > { %s207_s13 = sshll.u32 %s1563_s1, 4  ;;  %p1363_p4 = pnand %p1008_p1, %p1317_p3  ;;  %s208_s13 = int_to_ptr.vmem [resolvable:$true] %s207_s13 }
  0x1e   : > { %s1564_s14 = scalar_select %p1357_p2, 1, 0 }
  0x1f   : > { %s1091_s16 = scalar_lea.vmem %s197_s9, 16  ;;  %p1093_p10 = pneg %p1363_p4 }
  0x20   : > { %p1092_p6 = scmp.ne.s32.totalorder %s197_s9, %s1091_s16  ;;  %p1099_p9 = scmp.lt.s32.totalorder %s197_s9, %s197_s9 }
  0x21   : > { %p1100_p8 = scmp.lt.s32.totalorder %s1091_s16, %s1091_s16 }
  0x22   : > { %p1094_p11 = pnand %p1093_p10, %p1092_p6 }
  0x23   : > { %p1101_p7 = por %p1100_p8, %p1099_p9 }
  0x24   : > { %p1095_p13 = pneg %p1094_p11 }
  0x26   : > { %p1102_p5 = pnand %p1101_p7, %p1095_p13 }
  0x28   : > { %1105 = shalt.err (!%p1102_p5)
}
  0x29   : > { %s1239_s17 = smov [#allocation3]   ;;  %s1106_s24 = scalar_lea.vmem %s208_s13, 16 }
  0x2a   : > { %1011 = dma.vmem_to_smem (!%p1363_p4), %s197_s9, 16, %s1239_s17, [#allocation6]  }
  0x2b   : > { %p1107_p0 = scmp.ne.s32.totalorder %s208_s13, %s1106_s24  ;;  %p1114_p12 = scmp.lt.s32.totalorder %s208_s13, %s208_s13 }
  0x2c   : > { %p1115_p2 = scmp.lt.s32.totalorder %s1106_s24, %s1106_s24 }
  0x2d   : > { %p1109_p1 = pnand %p1107_p0, %p1093_p10 }
  0x2e   : > { %p1116_p6 = por %p1115_p2, %p1114_p12 }
  0x2f   : > { %p1110_p3 = pneg %p1109_p1 }
  0x31   : > { %p1117_p11 = pnand %p1116_p6, %p1110_p3 }
  0x33   : > { %1120 = shalt.err (!%p1117_p11)
}
  0x34   : > { %s1240_s25 = smov [#allocation7]   ;;  %s35_s28 = sadd.s32 1, %s1233_s22 }
  0x35   : > { %1014 = dma.vmem_to_smem (!%p1363_p4), %s208_s13, 16, %s1240_s25, [#allocation8]  }
  0x36   : > { %s228_s7 = sand.u32 1, %s1225_s20   ;;  %p37_p7 = scmp.ge.s32.totalorder %s35_s28, 2 }
  0x37   : > { %s991_s8 = smul.u32 24, %s228_s7  ;;  %s229_s13 = scalar_lea.sflag [#allocation4], %s228_s7 }
  0x38   : > { %s1581_s28 = smov (%p37_p7, %s35_s28), 0  ;;  %s992_s9 = smul.u32 384, %s1233_s22 }
  0x39   : > { %1566 = sst [smem:[#allocation15_spill]] %s1581_s28  ;;  %s128_s11 = ssub.s32 %s1233_s22, %s1581_s28 }
  0x3a   : > { %s232_s12 = scalar_lea.vmem [#allocation9], %s991_s8  ;;  %p131_p3 = scmp.eq.s32.totalorder %s128_s11, 0 }
  0x3b   : > { %s241_s16 = sshll.u32 %s232_s12, 4  ;;  %s240_s24 = scalar_lea.hbm %s1545_s4, %s992_s9  ;;  %s242_s16 = int_to_ptr.vmem [resolvable:$true] %s241_s16 }
  0x3c   : > { %s1386_s0 = scalar_select %p131_p3, %s1225_s20, %s133_s26  }
  0x3d   : > { %p1567_p8 = scmp.ne.s32.totalorder %s1564_s14, 0  ;;  %s1134_s25 = scalar_lea.vmem %s242_s16, 384 }
  0x3e   : > { %p1135_p12 = scmp.ne.s32.totalorder %s242_s16, %s1134_s25  ;;  %s1241_s1 = smov [#allocation9]  }
  0x3f   : > { %p1123_p9 = pneg %p1567_p8  ;;  %s1139_s28 = sshll.u32 %s1241_s1, 4  ;;  %s1140_s28 = int_to_ptr.vmem [resolvable:$false] %s1139_s28 }
  0x40   : > { %s1141_s8 = scalar_lea.vmem %s1140_s28, 768  ;;  %p1142_p4 = scmp.lt.s32.totalorder %s242_s16, %s1140_s28 }
  0x41   : > { %p1137_p13 = pnand %p1135_p12, %p1123_p9  ;;  %p1143_p10 = scmp.lt.s32.totalorder %s1141_s8, %s1134_s25 }
  0x43   : > { %p1138_p2 = pneg %p1137_p13  ;;  %p1144_p5 = por %p1143_p10, %p1142_p4 }
  0x45   : > { %p1145_p0 = pnand %p1144_p5, %p1138_p2 }
  0x47   : > { %1148 = shalt.err (!%p1145_p0)
}
  0x48   : > { %s1242_s9 = smov 64   ;;  %s1243_s26 = smov 4  }
  0x49   : > { %1018 = dma.hbm_to_vmem [thread:$0]  (!%p1567_p8), %s240_s24, 384, %s242_s16, %s229_s13, %s1242_s9, %s1242_s9, %s1243_s26  }
  0x4a   : > { %p1568_p1 = scmp.ne.s32.totalorder %s1562_s10, 0 }
  0x4b   : > { %p1569_p6 = scmp.ne.s32.totalorder (!%p1568_p1), %s1556_s27, 0 }
  0x4c   : > { %253 = sbr.rel (%p1568_p1) target bundleno = 542 (0x21e), region = 40 }
  0x51   : > { %1200 = dma.done.wait (%p1569_p6), [#allocation6], 16  }
  0x52   : > { %1202 = vsyncadd (%p1569_p6), [#allocation6], 4294967280 }
  0x53   : > { %1204 = dma.done.wait (%p1569_p6), [#allocation8], 16  }
  0x54   : > { %1206 = vsyncadd (%p1569_p6), [#allocation8], 4294967280  ;;  %s1403_s1 = sand.u32 1, %s1221_s19   ;;  %p1570_p11 = scmp.ne.s32.totalorder %s1558_s29, 0 }
  0x55   : > { %s993_s10 = smul.u32 24, %s1403_s1  ;;  %s264_s14 = scalar_lea.sflag [#allocation4], %s1403_s1 }
  0x57   : > { %s267_s28 = scalar_lea.vmem [#allocation9], %s993_s10 }
  0x58   : > { %1208 = dma.done.wait (%p1570_p11), %s264_s14, 384  }
  0x59   : > { %1210 = vsyncadd (%p1570_p11), %s264_s14, 4294966912 }
  0x5a   : > { %272 = sfence }
  0x5b   : > { %v1085_v0 = vld [vmem:[%s1544_s3] sm:$0xff]   ;;  %v1244_v1 = vmov 0.0   ;;  %vm1245_vm0 = vmmov 0   ;;  %vm341_vm1 = vcmask 130048   ;;  %v1088_v4 = vld [vmem:[%s267_s28 + $0x10] sm:$0xff]   ;;  %vm309_vm2 = vcmask 261120  }
  0x5c   : > { %955 = vmatprep.subr.bf16.mxu0 %v1244_v1  ;;  %v1086_v2 = vld [vmem:[%s267_s28] sm:$0xff]   ;;  %957 = vmatprep.mubr.msk.bf16.mxu0 %vm1245_vm0, %v1244_v1  ;;  %v1087_v3 = vld [vmem:[%s267_s28 + $0x8] sm:$0xff]   ;;  %312 = vst.msk [vmem:[#allocation2 + $0x10] sm:$0xff] %vm309_vm2, %v1244_v1  ;;  %310 = vst.msk [vmem:[#allocation2] sm:$0xff] %vm309_vm2, %v1244_v1  ;;  %s702_s15 = sld [smem:[#allocation3]]  ;;  %s994_s24 = smul.u32 96, %s1403_s1 }
  0x5d   : > { %956 = vmatpush3.bf16.msra.mxu0 %v1085_v0  ;;  %v1089_v5 = vld [vmem:[%s1543_s2] sm:$0xff]   ;;  %311 = vst.msk [vmem:[#allocation2 + $0x8] sm:$0xff] %vm309_vm2, %v1244_v1  ;;  %313 = vst.msk [vmem:[#allocation2 + $0x18] sm:$0xff] %vm309_vm2, %v1244_v1  ;;  %v1090_v11 = vld [vmem:[%s1543_s2 + $0x8] sm:$0xff]   ;;  %s708_s17 = sld [smem:[#allocation7]]  ;;  %s995_s10 = smul.u32 1536, %s1229_s21 }
  0x5e   : > { %967 = vmatprep.subr.bf16.mxu0 %v1244_v1  ;;  %963 = vmatprep.mubr.msk.bf16.mxu1 %vm341_vm1, %v1089_v5  ;;  %314 = vst.msk [vmem:[#allocation2 + $0x20] sm:$0xff] %vm309_vm2, %v1244_v1  ;;  %315 = vst.msk [vmem:[#allocation2 + $0x28] sm:$0xff] %vm309_vm2, %v1244_v1  ;;  %s925_s13 = sld [smem:[#allocation3 + $0x1]]  ;;  %s1450_s8 = scalar_lea.vmem [#allocation10], %s994_s24 }
  0x5f   : > { %316 = vst.msk [vmem:[#allocation2 + $0x30] sm:$0xff] %vm309_vm2, %v1244_v1  ;;  %317 = vst.msk [vmem:[#allocation2 + $0x38] sm:$0xff] %vm309_vm2, %v1244_v1  ;;  %s1446_s25 = sld [smem:[#allocation7 + $0x1]]  ;;  %s774_s14 = sshll.u32 %s1450_s8, 4  ;;  %s1489_s14 = int_to_ptr.vmem [resolvable:$true] %s774_s14 }
  0x60   : > { %958 = vmatmul.mubr.msk.bf16.vlgmr.msra.gmra.mxu0 %vm341_vm1, %v1086_v2  ;;  %318 = vst.msk [vmem:[#allocation2 + $0x40] sm:$0xff] %vm309_vm2, %v1244_v1  ;;  %319 = vst.msk [vmem:[#allocation2 + $0x48] sm:$0xff] %vm309_vm2, %v1244_v1  ;;  %s1455_s9 = sld [smem:[#allocation3 + $0x2]]  ;;  %s1487_s11 = scalar_lea.hbm %s1546_s5, %s995_s10 }
  0x61   : > { %968 = vmatpush3.bf16.msra.mxu0 %v1085_v0  ;;  %969 = vmatprep.mubr.msk.bf16.mxu0 %vm1245_vm0, %v1244_v1  ;;  %320 = vst.msk [vmem:[#allocation2 + $0x50] sm:$0xff] %vm309_vm2, %v1244_v1  ;;  %321 = vst.msk [vmem:[#allocation2 + $0x58] sm:$0xff] %vm309_vm2, %v1244_v1  ;;  %s932_s26 = sld [smem:[#allocation7 + $0x2]]  ;;  %s761_s21 = scalar_lea.sflag [#allocation5], %s1403_s1 }
  0x62   : > { %979 = vmatprep.subr.bf16.mxu0 %v1244_v1  ;;  %v703_v35 = vstv %s702_s15  ;;  %s1149_s27 = scalar_lea.vmem %s1489_s14, 1536  ;;  %p1571_p3 = scmp.ne.s32.totalorder %s1559_s30, 0 }
  0x63   : > { %v388_v22 = vld [vmem:[#allocation2 + $0x10] sm:$0xff]  ;;  %v386_v24 = vld [vmem:[#allocation2] sm:$0xff]  ;;  %v709_v40 = vstv %s708_s17  ;;  %p1150_p7 = scmp.ne.s32.totalorder %s1489_s14, %s1149_s27  ;;  %s1246_s29 = smov [#allocation10]  }
  0x64   : > { %v389_v27 = vld [vmem:[#allocation2 + $0x18] sm:$0xff]  ;;  %v387_v30 = vld [vmem:[#allocation2 + $0x8] sm:$0xff]  ;;  %v723_v58 = vstv %s925_s13  ;;  %s1153_s12 = sshll.u32 %s1246_s29, 4  ;;  %s1154_s12 = int_to_ptr.vmem [resolvable:$false] %s1153_s12 }
  0x65   : > { %v518_v37 = vld [vmem:[#allocation2 + $0x20] sm:$0xff]  ;;  %v519_v47 = vld [vmem:[#allocation2 + $0x28] sm:$0xff]  ;;  %p1151_p8 = pnand %p1150_p7, %p1571_p3  ;;  %s1155_s16 = scalar_lea.vmem %s1154_s12, 3072 }
  0x66   : > { %v520_v33 = vld [vmem:[#allocation2 + $0x30] sm:$0xff]  ;;  %v521_v42 = vld [vmem:[#allocation2 + $0x38] sm:$0xff]  ;;  %p1156_p12 = scmp.lt.s32.totalorder %s1489_s14, %s1154_s12  ;;  %p1157_p13 = scmp.lt.s32.totalorder %s1155_s16, %s1149_s27 }
  0x67   : > { %v633_v60 = vld [vmem:[#allocation2 + $0x40] sm:$0xff]  ;;  %p1152_p9 = pneg %p1151_p8 }
  0x68   : > { %970 = vmatmul.mubr.msk.bf16.vlgmr.msra.gmra.mxu0 %vm341_vm1, %v1087_v3  ;;  %v635_v53 = vld [vmem:[#allocation2 + $0x50] sm:$0xff]  ;;  %v636_v3 = vld [vmem:[#allocation2 + $0x58] sm:$0xff]  ;;  %p1158_p2 = por %p1157_p13, %p1156_p12 }
  0x69   : > { %980 = vmatpush3.bf16.msra.mxu0 %v1085_v0  ;;  %981 = vmatprep.mubr.msk.bf16.mxu0 %vm1245_vm0, %v1244_v1  ;;  %v729_v1 = vstv %s1446_s25 }
  0x6a   : > { %p1159_p4 = pnand %p1158_p2, %p1152_p9 }
  0x70   : > { %982 = vmatmul.mubr.msk.bf16.vlgmr.msra.gmra.mxu0 %vm341_vm1, %v1088_v4 }
 0x120   : > { %v379_v6 = vpop.f32.mrf.mxu0 }
 0x122   : > { %v959_v7 = vpop.f32.mrf.mxu0 }
 0x124   : > { %v382_v8 = vpop.f32.mrf.mxu0 }
 0x125   : > { %v390_v9 = vpack.c.bf16 %v382_v8, %v379_v6 }
 0x126   : > { %v960_v10 = vpop.f32.mrf.mxu0 }
 0x127   : > { %961 = vmatprep.subr.bf16.mxu1 %v390_v9 }
 0x128   : > { %962 = vmatpush3.bf16.msra.mxu1 %v390_v9  ;;  %v510_v12 = vpop.f32.mrf.mxu0  ;;  %v634_v9 = vld [vmem:[#allocation2 + $0x48] sm:$0xff] }
 0x12a   : > { %v971_v13 = vpop.f32.mrf.mxu0 }
 0x12b   : > { %964 = vmatmul.mubr.msk.bf16.vlgmr.msra.gmra.mxu1 %vm341_vm1, %v1090_v11 }
 0x12c   : > { %v513_v14 = vpop.f32.mrf.mxu0  ;;  %975 = vmatprep.mubr.msk.bf16.mxu1 %vm341_vm1, %v1089_v5 }
 0x12d   : > { %v522_v15 = vpack.c.bf16 %v513_v14, %v510_v12 }
 0x12e   : > { %v972_v16 = vpop.f32.mrf.mxu0 }
 0x12f   : > { %973 = vmatprep.subr.bf16.mxu1 %v522_v15 }
 0x130   : > { %974 = vmatpush3.bf16.msra.mxu1 %v522_v15  ;;  %v625_v17 = vpop.f32.mrf.mxu0 }
 0x132   : > { %v983_v18 = vpop.f32.mrf.mxu0 }
 0x133   : > { %976 = vmatmul.mubr.msk.bf16.vlgmr.msra.gmra.mxu1 %vm341_vm1, %v1090_v11 }
 0x134   : > { %v628_v19 = vpop.f32.mrf.mxu0  ;;  %987 = vmatprep.mubr.msk.bf16.mxu1 %vm341_vm1, %v1089_v5 }
 0x135   : > { %v637_v20 = vpack.c.bf16 %v628_v19, %v625_v17  ;;  %v744_v19 = vstv %s1455_s9 }
 0x136   : > { %v984_v21 = vpop.f32.mrf.mxu0 }
 0x137   : > { %985 = vmatprep.subr.bf16.mxu1 %v637_v20 }
 0x138   : > { %986 = vmatpush3.bf16.msra.mxu1 %v637_v20 }
 0x13b   : > { %988 = vmatmul.mubr.msk.bf16.vlgmr.msra.gmra.mxu1 %vm341_vm1, %v1090_v11 }
 0x1eb   : > { %v965_v23 = vpop.f32.mrf.mxu1 }
 0x1ec   : > { %v458_v25 = vadd.f32 %v965_v23, %v388_v22  ;;  %v750_v23 = vstv %s932_s26 }
 0x1ed   : > { %v441_v26 = vpop.f32.mrf.mxu1 }
 0x1ee   : > { %463 = vst.msk [vmem:[#allocation2 + $0x10] sm:$0xff] %vm309_vm2, %v458_v25  ;;  %v456_v28 = vadd.f32 %v441_v26, %v386_v24 }
 0x1ef   : > { %v966_v29 = vpop.f32.mrf.mxu1 }
 0x1f0   : > { %461 = vst.msk [vmem:[#allocation2] sm:$0xff] %vm309_vm2, %v456_v28  ;;  %v459_v31 = vadd.f32 %v966_v29, %v389_v27 }
 0x1f1   : > { %v444_v32 = vpop.f32.mrf.mxu1 }
 0x1f2   : > { %464 = vst.msk [vmem:[#allocation2 + $0x18] sm:$0xff] %vm309_vm2, %v459_v31  ;;  %v457_v34 = vadd.f32 %v444_v32, %v387_v30 }
 0x1f3   : > { %v977_v36 = vpop.f32.mrf.mxu1 }
 0x1f4   : > { %462 = vst.msk [vmem:[#allocation2 + $0x8] sm:$0xff] %vm309_vm2, %v457_v34  ;;  %v574_v38 = vadd.f32 %v977_v36, %v520_v33 }
 0x1f5   : > { %v700_v39 = vld [vmem:[#allocation2 + $0x10] sm:$0xff]  ;;  %v557_v41 = vpop.f32.mrf.mxu1 }
 0x1f6   : > { %v706_v43 = vmul.f32 %v703_v35, %v700_v39  ;;  %578 = vst.msk [vmem:[#allocation2 + $0x30] sm:$0xff] %vm309_vm2, %v574_v38  ;;  %v572_v44 = vadd.f32 %v557_v41, %v518_v37 }
 0x1f7   : > { %v698_v45 = vld [vmem:[#allocation2] sm:$0xff]  ;;  %v978_v46 = vpop.f32.mrf.mxu1 }
 0x1f8   : > { %v712_v48 = vadd.f32 %v709_v40, %v706_v43  ;;  %v704_v49 = vmul.f32 %v703_v35, %v698_v45  ;;  %576 = vst.msk [vmem:[#allocation2 + $0x20] sm:$0xff] %vm309_vm2, %v572_v44  ;;  %v575_v50 = vadd.f32 %v978_v46, %v521_v42 }
 0x1f9   : > { %v701_v51 = vld [vmem:[#allocation2 + $0x18] sm:$0xff]  ;;  %v560_v52 = vpop.f32.mrf.mxu1 }
 0x1fa   : > { %716 = vst.msk [vmem:[%s1450_s8 + $0x10] sm:$0xff] %vm309_vm2, %v712_v48  ;;  %v710_v54 = vadd.f32 %v709_v40, %v704_v49  ;;  %v707_v55 = vmul.f32 %v703_v35, %v701_v51  ;;  %579 = vst.msk [vmem:[#allocation2 + $0x38] sm:$0xff] %vm309_vm2, %v575_v50  ;;  %v573_v56 = vadd.f32 %v560_v52, %v519_v47 }
 0x1fb   : > { %v699_v57 = vld [vmem:[#allocation2 + $0x8] sm:$0xff]  ;;  %v989_v59 = vpop.f32.mrf.mxu1 }
 0x1fc   : > { %714 = vst.msk [vmem:[%s1450_s8] sm:$0xff] %vm309_vm2, %v710_v54  ;;  %v713_v61 = vadd.f32 %v709_v40, %v707_v55  ;;  %v705_v62 = vmul.f32 %v703_v35, %v699_v57  ;;  %577 = vst.msk [vmem:[#allocation2 + $0x28] sm:$0xff] %vm309_vm2, %v573_v56  ;;  %v689_v63 = vadd.f32 %v989_v59, %v635_v53 }
 0x1fd   : > { %v720_v0 = vld [vmem:[#allocation2 + $0x30] sm:$0xff]  ;;  %v672_v2 = vpop.f32.mrf.mxu1 }
 0x1fe   : > { %717 = vst.msk [vmem:[%s1450_s8 + $0x18] sm:$0xff] %vm309_vm2, %v713_v61  ;;  %v711_v4 = vadd.f32 %v709_v40, %v705_v62  ;;  %v726_v5 = vmul.f32 %v723_v58, %v720_v0  ;;  %693 = vst.msk [vmem:[#allocation2 + $0x50] sm:$0xff] %vm309_vm2, %v689_v63  ;;  %v687_v6 = vadd.f32 %v672_v2, %v633_v60 }
 0x1ff   : > { %v718_v7 = vld [vmem:[#allocation2 + $0x20] sm:$0xff]  ;;  %v990_v8 = vpop.f32.mrf.mxu1 }
 0x200   : > { %715 = vst.msk [vmem:[%s1450_s8 + $0x8] sm:$0xff] %vm309_vm2, %v711_v4  ;;  %v732_v10 = vadd.f32 %v729_v1, %v726_v5  ;;  %v724_v11 = vmul.f32 %v723_v58, %v718_v7  ;;  %691 = vst.msk [vmem:[#allocation2 + $0x40] sm:$0xff] %vm309_vm2, %v687_v6  ;;  %v690_v12 = vadd.f32 %v990_v8, %v636_v3 }
 0x201   : > { %v721_v13 = vld [vmem:[#allocation2 + $0x38] sm:$0xff]  ;;  %v675_v14 = vpop.f32.mrf.mxu1 }
 0x202   : > { %929 = vst.msk [vmem:[%s1450_s8 + $0x30] sm:$0xff] %vm309_vm2, %v732_v10  ;;  %v730_v15 = vadd.f32 %v729_v1, %v724_v11  ;;  %v727_v16 = vmul.f32 %v723_v58, %v721_v13  ;;  %694 = vst.msk [vmem:[#allocation2 + $0x58] sm:$0xff] %vm309_vm2, %v690_v12  ;;  %v688_v17 = vadd.f32 %v675_v14, %v634_v9 }
 0x203   : > { %v719_v18 = vld [vmem:[#allocation2 + $0x28] sm:$0xff] }
 0x204   : > { %927 = vst.msk [vmem:[%s1450_s8 + $0x20] sm:$0xff] %vm309_vm2, %v730_v15  ;;  %v733_v20 = vadd.f32 %v729_v1, %v727_v16  ;;  %v725_v21 = vmul.f32 %v723_v58, %v719_v18  ;;  %692 = vst.msk [vmem:[#allocation2 + $0x48] sm:$0xff] %vm309_vm2, %v688_v17 }
 0x205   : > { %v741_v22 = vld [vmem:[#allocation2 + $0x50] sm:$0xff] }
 0x206   : > { %930 = vst.msk [vmem:[%s1450_s8 + $0x38] sm:$0xff] %vm309_vm2, %v733_v20  ;;  %v731_v24 = vadd.f32 %v729_v1, %v725_v21  ;;  %v747_v25 = vmul.f32 %v744_v19, %v741_v22 }
 0x207   : > { %v739_v26 = vld [vmem:[#allocation2 + $0x40] sm:$0xff] }
 0x208   : > { %928 = vst.msk [vmem:[%s1450_s8 + $0x28] sm:$0xff] %vm309_vm2, %v731_v24  ;;  %v753_v27 = vadd.f32 %v750_v23, %v747_v25  ;;  %v745_v28 = vmul.f32 %v744_v19, %v739_v26 }
 0x209   : > { %v742_v29 = vld [vmem:[#allocation2 + $0x58] sm:$0xff] }
 0x20a   : > { %935 = vst.msk [vmem:[%s1450_s8 + $0x50] sm:$0xff] %vm309_vm2, %v753_v27  ;;  %v751_v30 = vadd.f32 %v750_v23, %v745_v28  ;;  %v748_v31 = vmul.f32 %v744_v19, %v742_v29 }
 0x20b   : > { %v740_v32 = vld [vmem:[#allocation2 + $0x48] sm:$0xff] }
 0x20c   : > { %933 = vst.msk [vmem:[%s1450_s8 + $0x40] sm:$0xff] %vm309_vm2, %v751_v30  ;;  %v754_v33 = vadd.f32 %v750_v23, %v748_v31  ;;  %v746_v34 = vmul.f32 %v744_v19, %v740_v32 }
 0x20e   : > { %936 = vst.msk [vmem:[%s1450_s8 + $0x58] sm:$0xff] %vm309_vm2, %v754_v33  ;;  %v752_v35 = vadd.f32 %v750_v23, %v746_v34 }
 0x210   : > { %934 = vst.msk [vmem:[%s1450_s8 + $0x48] sm:$0xff] %vm309_vm2, %v752_v35 }
 0x211   : > { %1162 = shalt.err (!%p1159_p4)
}
 0x212   : > { %s1163_s15 = scalar_lea.hbm %s1487_s11, 1536  ;;  %s1167_s13 = scalar_lea.hbm %s1546_s5, 3072 }
 0x213   : > { %p1164_p10 = scmp.ne.s32.totalorder %s1487_s11, %s1163_s15  ;;  %p1168_p1 = scmp.lt.s32.totalorder %s1487_s11, %s1546_s5 }
 0x214   : > { %p1169_p6 = scmp.lt.s32.totalorder %s1167_s13, %s1163_s15 }
 0x215   : > { %p1165_p5 = pnand %p1164_p10, %p1571_p3 }
 0x216   : > { %p1170_p11 = por %p1169_p6, %p1168_p1 }
 0x217   : > { %p1166_p0 = pneg %p1165_p5 }
 0x219   : > { %p1171_p7 = pnand %p1170_p11, %p1166_p0 }
 0x21b   : > { %1174 = shalt.err (!%p1171_p7)
}
 0x21c   : > { %s1247_s9 = smov 128   ;;  %s1248_s26 = smov 8  }
 0x21d   : > { %1006 = dma.vmem_to_hbm [thread:$0]  (%p1571_p3), %s1489_s14, 1536, %s1487_s11, %s761_s21, %s1247_s9, %s1247_s9, %s1248_s26  }
 0x21e PF: > { %s789_s10 = sand.u32 1, %s1217_s18   ;;  %p1572_p8 = scmp.ne.s32.totalorder %s1560_s6, 0 }
 0x21f   : > { %p1573_p9 = scmp.ge.s32.totalorder %s1237_s23, 2  ;;  %s790_s28 = scalar_lea.sflag [#allocation5], %s789_s10 }
 0x221   : > { %p1020_p12 = pnand %p1573_p9, %p1572_p8 }
 0x223   : > { %p1021_p13 = pneg %p1020_p12 }
 0x225   : > { %1212 = dma.done.wait (%p1021_p13), %s790_s28, 1536  }
 0x226   : > { %1214 = vsyncadd (%p1021_p13), %s790_s28, 4294965760  ;;  %s23_s23 = sadd.s32 1, %s1237_s23   ;;  %s1574_s30 = sld [smem:[#allocation15_spill]] }
 0x227   : > { %p20_p2 = scmp.ge.s32.totalorder %s23_s23, 4   ;;  %s1575_s18 = smov %s1221_s19 }
 0x228   : > { %s1576_s19 = smov %s1225_s20  ;;  %s1577_s20 = smov %s1386_s0 }
 0x229   : > { %s1578_s21 = smov %s1233_s22  ;;  %22 = sbr.rel (!%p20_p2) target bundleno = 11 (0xb), region = 111 }
 0x22c   : > { %s1579_s22 = smov %s1574_s30 }
 0x22e   :  { %795 = vsyncpa [#allocation4], 1 }
 0x22f   :  { %797 = vsyncpa [#allocation4 + $0x1], 1 }
 0x230   :  { %798 = vsyncpa [#allocation5], 1 }
 0x231   :  { %800 = vsyncpa [#allocation5 + $0x1], 1 }
 0x232   :  { %801 = vsyncpa [#allocation6], 1 }
 0x233   :  { %803 = vsyncpa [#allocation6 + $0x1], 1 }
 0x234   :  { %804 = vsyncpa [#allocation8], 1 }

</bundles_post_ra>
